<compile_context>
chip_gen: v6e
topology: v6e:2x2x1
jax: 0.10.0
libtpu: 0.0.40
codegen_flags: <defaults>
</compile_context>

<pallas_src>
import functools

import jax
import jax.numpy as jnp
from jax.experimental import pallas as pl
from jax.experimental.pallas import tpu as pltpu


def _round_up(x, m):
    return (x + m - 1) // m * m


def linear_kernel(x_ref, w_ref, b_ref, o_ref):
    # bf16 operands on the MXU, f32 accumulation, f32 bias epilogue.
    acc = jnp.dot(x_ref[...], w_ref[...], preferred_element_type=jnp.float32)
    o_ref[...] = (acc + b_ref[...]).astype(o_ref.dtype)


def prepare_params(w, b, lane_pad=128):
    """One-time parameter prep (call at init, NOT per forward):
    pre-transpose W to (C_in, C_out), zero-pad C_out to a multiple of `lane_pad`
    for lane-dense stores, and cast the weight to bf16 (native MXU operand)."""
    num_classes, in_channels = w.shape
    c_out_pad = _round_up(num_classes, lane_pad)
    w_t_pad = jnp.zeros((in_channels, c_out_pad), jnp.float32)
    w_t_pad = w_t_pad.at[:, :num_classes].set(w.T)
    b_pad = jnp.zeros((1, c_out_pad), jnp.float32)
    b_pad = b_pad.at[:, :num_classes].set(b)
    return w_t_pad.astype(jnp.bfloat16), b_pad


@functools.partial(jax.jit, static_argnames=("num_classes",))
def classification_model_forward(x, w_t_pad, b_pad, *, num_classes):
    """x: (B, C_in) f32, w_t_pad: (C_in, C_out_pad) bf16, b_pad: (1, C_out_pad) f32
    -> (B, num_classes) f32."""
    B, C_in = x.shape
    C_out_pad = w_t_pad.shape[1]

    # Batch tile: at least 16 rows (bf16 sublane packing), cap at 512 so large
    # batches pipeline across grid steps instead of one giant resident block.
    TM = 512 if B > 512 else _round_up(max(B, 1), 16)
    B_pad = _round_up(B, TM)

    x_bf16 = x.astype(jnp.bfloat16)
    if B_pad != B:
        x_bf16 = jnp.zeros((B_pad, C_in), jnp.bfloat16).at[:B, :].set(x_bf16)

    grid = (B_pad // TM,)
    flops = 2 * B_pad * C_in * C_out_pad
    bytes_accessed = (
        B_pad * C_in * 2               # x (bf16)
        + C_in * C_out_pad * 2         # weight (bf16)
        + C_out_pad * 4                # bias (f32)
        + B_pad * C_out_pad * 4        # output (f32)
    )

    y_pad = pl.pallas_call(
        linear_kernel,
        out_shape=jax.ShapeDtypeStruct((B_pad, C_out_pad), jnp.float32),
        grid_spec=pltpu.PrefetchScalarGridSpec(
            num_scalar_prefetch=0,
            grid=grid,
            in_specs=[
                pl.BlockSpec((TM, C_in), lambda i: (i, 0)),          # x: tiled over batch
                pl.BlockSpec((C_in, C_out_pad), lambda i: (0, 0)),   # weight: resident
                pl.BlockSpec((1, C_out_pad), lambda i: (0, 0)),      # bias: resident
            ],
            out_specs=pl.BlockSpec((TM, C_out_pad), lambda i: (i, 0)),
        ),
        compiler_params=pltpu.CompilerParams(
            # Independent batch tiles: shard across TensorCores on v7x, harmless elsewhere.
            dimension_semantics=("parallel",),
        ),
        cost_estimate=pl.CostEstimate(
            flops=flops, transcendentals=0, bytes_accessed=bytes_accessed
        ),
    )(x_bf16, w_t_pad, b_pad)

    # Slice padded rows / padded classes off outside the kernel so zero columns
    # never leak into downstream softmax/argmax.
    return y_pad[:B, :num_classes]


def init_params(key, in_channels=256, num_classes=200):
    # Deterministic init mimicking nn.Linear default: U(-1/sqrt(fan_in), 1/sqrt(fan_in))
    kw, kb = jax.random.split(key)
    bound = 1.0 / jnp.sqrt(jnp.float32(in_channels))
    w = jax.random.uniform(kw, (num_classes, in_channels), jnp.float32, -bound, bound)
    b = jax.random.uniform(kb, (num_classes,), jnp.float32, -bound, bound)
    return w, b


if __name__ == "__main__":
    key = jax.random.PRNGKey(0)
    k_x, k_p = jax.random.split(key)

    in_channels = 256
    num_classes = 200
    batch = 8

    x = jax.random.normal(k_x, (batch, in_channels), dtype=jnp.float32)
    w, b = init_params(k_p, in_channels, num_classes)

    # One-time parameter preparation (pre-transpose + pad + bf16 cast).
    w_t_pad, b_pad = prepare_params(w, b)

    y = classification_model_forward(x, w_t_pad, b_pad, num_classes=num_classes)
    y = jax.block_until_ready(y)

    # Reference check against plain JAX f32 (same math as PyTorch Linear).
    # Tolerance loosened because the kernel uses bf16 MXU operands (f32 accumulation).
    y_ref = x @ w.T + b
    assert y.shape == (batch, num_classes)
    assert jnp.allclose(y, y_ref, atol=5e-2, rtol=5e-2)

    print("KERNEL_OK")
</pallas_src>

<mosaic_0001>
module attributes {stable_mosaic.version = 11 : i64} {
  func.func @linear_kernel(%arg0: i32, %arg1: memref<16x256xbf16, #tpu.memory_space<vmem>>, %arg2: memref<256x256xbf16, #tpu.memory_space<vmem>>, %arg3: memref<1x256xf32, #tpu.memory_space<vmem>>, %arg4: memref<16x256xf32, #tpu.memory_space<vmem>>) attributes {dimension_semantics = [#tpu.dimension_semantics<parallel>], iteration_bounds = array<i64: 1>, scalar_prefetch = 0 : i64, scratch_operands = 0 : i64, tpu.core_type = #tpu.core_type<tc>, window_params = [{transform_indices = @transform_0, window_bounds = array<i64: 16, 256>}, {pipeline_mode = #tpu.pipeline_mode<synchronous>, transform_indices = @transform_1, window_bounds = array<i64: 256, 256>}, {pipeline_mode = #tpu.pipeline_mode<synchronous>, transform_indices = @transform_2, window_bounds = array<i64: 1, 256>}, {transform_indices = @transform_3, window_bounds = array<i64: 16, 256>}]} {
    %c0 = arith.constant 0 : index
    %c0_0 = arith.constant 0 : index
    %0 = vector.load %arg1[%c0, %c0_0] : memref<16x256xbf16, #tpu.memory_space<vmem>>, vector<16x256xbf16>
    %c0_1 = arith.constant 0 : index
    %c0_2 = arith.constant 0 : index
    %1 = vector.load %arg2[%c0_1, %c0_2] : memref<256x256xbf16, #tpu.memory_space<vmem>>, vector<256x256xbf16>
    %cst = arith.constant dense<0.000000e+00> : vector<16x256xf32>
    %2 = tpu.matmul %0, %1, %cst {dimension_numbers = #tpu.dot_dimension_numbers<[1], [0], [0], [1], [0, 0, 1, 1], [], []>} : vector<16x256xbf16>, vector<256x256xbf16>, vector<16x256xf32> -> vector<16x256xf32>
    %c0_3 = arith.constant 0 : index
    %c0_4 = arith.constant 0 : index
    %3 = vector.load %arg3[%c0_3, %c0_4] : memref<1x256xf32, #tpu.memory_space<vmem>>, vector<1x256xf32>
    %4 = vector.broadcast %3 : vector<1x256xf32> to vector<16x256xf32>
    %5 = arith.addf %2, %4 : vector<16x256xf32>
    %c0_5 = arith.constant 0 : index
    %c0_6 = arith.constant 0 : index
    %6 = vector.load %arg4[%c0_5, %c0_6] : memref<16x256xf32, #tpu.memory_space<vmem>>, vector<16x256xf32>
    tpu.vector_store %arg4[%c0_5, %c0_6], %5 {strides = array<i32>} : memref<16x256xf32, #tpu.memory_space<vmem>>, vector<16x256xf32>,
    return
  }
  func.func @transform_0(%arg0: i32) -> (i32, i32) {
    %c0_i32 = arith.constant 0 : i32
    %c0_i32_0 = arith.constant 0 : i32
    return %arg0, %c0_i32 : i32, i32
  }
  func.func @transform_1(%arg0: i32) -> (i32, i32) {
    %c0_i32 = arith.constant 0 : i32
    %c0_i32_0 = arith.constant 0 : i32
    %c0_i32_1 = arith.constant 0 : i32
    return %c0_i32, %c0_i32_0 : i32, i32
  }
  func.func @transform_2(%arg0: i32) -> (i32, i32) {
    %c0_i32 = arith.constant 0 : i32
    %c0_i32_0 = arith.constant 0 : i32
    %c0_i32_1 = arith.constant 0 : i32
    return %c0_i32, %c0_i32_0 : i32, i32
  }
  func.func @transform_3(%arg0: i32) -> (i32, i32) {
    %c0_i32 = arith.constant 0 : i32
    %c0_i32_0 = arith.constant 0 : i32
    return %arg0, %c0_i32 : i32, i32
  }
}

</mosaic_0001>

<bundles_post_ra>
// kernel: classification_model_forward.1
= control target key start
LH: loop header
LB: loop body
LE: loop exit
PB: predicated region body
PF: predicated region fallthrough
CT: control target
= control target key end

     0   :  { %8 = vsyncpa [#allocation3], 0  ;;  %s406_s12 = smov [#allocation2]   ;;  %s453_s0 = inlined_call_operand.vmem [shape: bf16[16,256], index: 0, kind: input, shape index: {}]   ;;  %s454_s1 = inlined_call_operand.hbm [shape: bf16[256,256], index: 1, kind: input, shape index: {}]   ;;  %s455_s2 = inlined_call_operand.vmem [shape: f32[1,256], index: 2, kind: input, shape index: {}]   ;;  %s456_s3 = inlined_call_operand.vmem [shape: f32[16,256], index: 3, kind: output, shape index: {}]  }
   0x1   :  { %s16_s13 = sshll.u32 %s406_s12, 4  ;;  %s17_s13 = int_to_ptr.vmem [resolvable:$true] %s16_s13 }
   0x2   :  { %s392_s14 = scalar_lea.vmem %s17_s13, 4096  ;;  %p397_p1 = scmp.lt.s32.totalorder %s17_s13, %s17_s13 }
   0x3   :  { %p393_p0 = scmp.ne.s32.totalorder %s17_s13, %s392_s14  ;;  %p398_p2 = scmp.lt.s32.totalorder %s392_s14, %s392_s14 }
   0x5   :  { %p399_p3 = por %p398_p2, %p397_p1 }
   0x7   :  { %p400_p4 = pnand %p399_p3, %p393_p0 }
   0x9   :  { %403 = shalt.err (!%p400_p4)
}
   0xa   :  { %s407_s15 = smov 128   ;;  %s408_s16 = smov 8  }
   0xb   :  { %22 = dma.hbm_to_vmem [thread:$0]  %s454_s1, 4096, %s17_s13, [#allocation3], %s407_s15, %s407_s15, %s408_s16  }
   0xc   :  { %404 = dma.done.wait [#allocation3], 4096  }
   0xd   :  { %405 = vsyncadd [#allocation3], 4294963200  ;;  %v333_v0 = vld [vmem:[#allocation2 + $0x74] ss:$8 sps:$4 sm:$0xff]   ;;  %v335_v1 = vld [vmem:[#allocation2 + $0x70] ss:$8 sps:$4 sm:$0xff]   ;;  %v64_v34 = vlaneseq }
   0xe   :  { %244 = vmatprep.subr.bf16.mxu0 %v333_v0  ;;  %v336_v2 = vld [vmem:[#allocation2 + $0x64] ss:$8 sps:$4 sm:$0xff]   ;;  %v338_v3 = vld [vmem:[#allocation2 + $0x60] ss:$8 sps:$4 sm:$0xff]   ;;  %v339_v4 = vld [vmem:[#allocation2 + $0x54] ss:$8 sps:$4 sm:$0xff]  }
   0xf   :  { %245 = vmatpush1.bf16.msra.mxu0 %v335_v1  ;;  %v341_v5 = vld [vmem:[#allocation2 + $0x50] ss:$8 sps:$4 sm:$0xff]   ;;  %v342_v6 = vld [vmem:[#allocation2 + $0x44] ss:$8 sps:$4 sm:$0xff]   ;;  %v344_v7 = vld [vmem:[#allocation2 + $0x40] ss:$8 sps:$4 sm:$0xff]  }
  0x10   :  { %246 = vmatprep.subr.bf16.mxu0 %v336_v2  ;;  %v345_v8 = vld [vmem:[#allocation2 + $0x34] ss:$8 sps:$4 sm:$0xff]   ;;  %v347_v9 = vld [vmem:[#allocation2 + $0x30] ss:$8 sps:$4 sm:$0xff]   ;;  %v348_v10 = vld [vmem:[#allocation2 + $0x24] ss:$8 sps:$4 sm:$0xff]  }
  0x11   :  { %v350_v11 = vld [vmem:[#allocation2 + $0x20] ss:$8 sps:$4 sm:$0xff]   ;;  %v351_v12 = vld [vmem:[#allocation2 + $0x14] ss:$8 sps:$4 sm:$0xff]   ;;  %v383_v13 = vld [vmem:[%s453_s0 + $0x4] ss:$8 sps:$4 sm:$0xff]  }
  0x12   :  { %v353_v14 = vld [vmem:[#allocation2 + $0x10] ss:$8 sps:$4 sm:$0xff]   ;;  %v354_v15 = vld [vmem:[#allocation2 + $0x4] ss:$8 sps:$4 sm:$0xff]   ;;  %276 = vmatprep.mubr.bf16.mxu0 %v383_v13  ;;  %v356_v16 = vld [vmem:[#allocation2] ss:$8 sps:$4 sm:$0xff]  }
  0x13   :  { %247 = vmatpush1.bf16.msra.mxu0 %v338_v3  ;;  %v357_v17 = vld [vmem:[#allocation2 + $0xf4] ss:$8 sps:$4 sm:$0xff]   ;;  %v359_v18 = vld [vmem:[#allocation2 + $0xf0] ss:$8 sps:$4 sm:$0xff]   ;;  %v360_v19 = vld [vmem:[#allocation2 + $0xe4] ss:$8 sps:$4 sm:$0xff]  }
  0x14   :  { %248 = vmatprep.subr.bf16.mxu0 %v339_v4  ;;  %v362_v20 = vld [vmem:[#allocation2 + $0xe0] ss:$8 sps:$4 sm:$0xff]   ;;  %v363_v21 = vld [vmem:[#allocation2 + $0xd4] ss:$8 sps:$4 sm:$0xff]   ;;  %v365_v22 = vld [vmem:[#allocation2 + $0xd0] ss:$8 sps:$4 sm:$0xff]  }
  0x15   :  { %v366_v23 = vld [vmem:[#allocation2 + $0xc4] ss:$8 sps:$4 sm:$0xff]   ;;  %v368_v24 = vld [vmem:[#allocation2 + $0xc0] ss:$8 sps:$4 sm:$0xff]   ;;  %v369_v25 = vld [vmem:[#allocation2 + $0xb4] ss:$8 sps:$4 sm:$0xff]  }
  0x16   :  { %v371_v26 = vld [vmem:[#allocation2 + $0xb0] ss:$8 sps:$4 sm:$0xff]   ;;  %v372_v27 = vld [vmem:[#allocation2 + $0xa4] ss:$8 sps:$4 sm:$0xff]   ;;  %v374_v28 = vld [vmem:[#allocation2 + $0xa0] ss:$8 sps:$4 sm:$0xff]  }
  0x17   :  { %249 = vmatpush1.bf16.msra.mxu0 %v341_v5  ;;  %v375_v29 = vld [vmem:[#allocation2 + $0x94] ss:$8 sps:$4 sm:$0xff]   ;;  %v377_v30 = vld [vmem:[#allocation2 + $0x90] ss:$8 sps:$4 sm:$0xff]   ;;  %v378_v31 = vld [vmem:[#allocation2 + $0x84] ss:$8 sps:$4 sm:$0xff]  }
  0x18   :  { %250 = vmatprep.subr.bf16.mxu0 %v342_v6  ;;  %v380_v32 = vld [vmem:[#allocation2 + $0x80] ss:$8 sps:$4 sm:$0xff]   ;;  %v65_v35 = vshrl.u32 %v64_v34, 7 }
  0x19   :  { %v381_v33 = vld [vmem:[%s453_s0] ss:$8 sps:$4 sm:$0xff]  }
  0x1a   :  { %v66_v36 = vsub.s32 0, %v65_v35  ;;  %v62_v37 = vld [vmem:[%s455_s2] sm:$0x3]  ;;  %v70_v38 = vsub.s32 1, %v65_v35 }
  0x1b   :  { %251 = vmatpush1.bf16.msra.mxu0 %v344_v7 }
  0x1c   :  { %252 = vmatprep.subr.bf16.mxu0 %v345_v8  ;;  %v67_v39 = vrot.slane %v62_v37, %v66_v36  ;;  %v71_v40 = vrot.slane %v62_v37, %v70_v38 }
  0x1f   :  { %253 = vmatpush1.bf16.msra.mxu0 %v347_v9 }
  0x20   :  { %254 = vmatprep.subr.bf16.mxu0 %v348_v10 }
  0x23   :  { %255 = vmatpush1.bf16.msra.mxu0 %v350_v11 }
  0x24   :  { %256 = vmatprep.subr.bf16.mxu0 %v351_v12 }
  0x27   :  { %257 = vmatpush1.bf16.msra.mxu0 %v353_v14 }
  0x28   :  { %258 = vmatprep.subr.bf16.mxu0 %v354_v15 }
  0x2b   :  { %259 = vmatpush1.bf16.msra.mxu0 %v356_v16 }
  0x2c   :  { %260 = vmatprep.subr.bf16.mxu0 %v357_v17 }
  0x2f   :  { %261 = vmatpush2.bf16.msra.mxu0 %v359_v18 }
  0x30   :  { %262 = vmatprep.subr.bf16.mxu0 %v360_v19 }
  0x33   :  { %263 = vmatpush2.bf16.msra.mxu0 %v362_v20 }
  0x34   :  { %264 = vmatprep.subr.bf16.mxu0 %v363_v21 }
  0x37   :  { %265 = vmatpush2.bf16.msra.mxu0 %v365_v22 }
  0x38   :  { %266 = vmatprep.subr.bf16.mxu0 %v366_v23 }
  0x3b   :  { %267 = vmatpush2.bf16.msra.mxu0 %v368_v24 }
  0x3c   :  { %268 = vmatprep.subr.bf16.mxu0 %v369_v25 }
  0x3f   :  { %269 = vmatpush2.bf16.msra.mxu0 %v371_v26 }
  0x40   :  { %270 = vmatprep.subr.bf16.mxu0 %v372_v27 }
  0x43   :  { %271 = vmatpush2.bf16.msra.mxu0 %v374_v28 }
  0x44   :  { %272 = vmatprep.subr.bf16.mxu0 %v375_v29 }
  0x47   :  { %273 = vmatpush2.bf16.msra.mxu0 %v377_v30 }
  0x48   :  { %274 = vmatprep.subr.bf16.mxu0 %v378_v31 }
  0x4b   :  { %275 = vmatpush2.bf16.msra.mxu0 %v380_v32 }
  0x4e   :  { %277 = vmatmul.mubr.bf16.vlgmr.msra.gmra.mxu0 %v381_v33 }
 0x10e   :  { %v278_v41 = vpop.f32.mrf.mxu0 }
 0x10f   :  { %v279_v42 = vadd.f32 %v278_v41, %v67_v39 }
 0x110   :  { %v280_v43 = vpop.f32.mrf.mxu0 }
 0x111   :  { %287 = vst [vmem:[%s456_s3] sm:$0xff] %v279_v42  ;;  %v281_v44 = vadd.f32 %v280_v43, %v71_v40 }
 0x112   :  { %v282_v45 = vpop.f32.mrf.mxu0 }
 0x113   :  { %288 = vst [vmem:[%s456_s3 + $0x8] sm:$0xff] %v281_v44  ;;  %v283_v46 = vadd.f32 %v282_v45, %v67_v39 }
 0x114   :  { %v284_v47 = vpop.f32.mrf.mxu0 }
 0x115   :  { %289 = vst [vmem:[%s456_s3 + $0x10] sm:$0xff] %v283_v46  ;;  %v285_v48 = vadd.f32 %v284_v47, %v71_v40 }
 0x117   :  { %290 = vst [vmem:[%s456_s3 + $0x18] sm:$0xff] %v285_v48 }
 0x118   :  { %295 = vsyncpa [#allocation3], 1 }

</bundles_post_ra>
